<compile_context>
chip_gen: v7x
topology: tpu7x:2x2x1
jax: 0.10.0
libtpu: 0.0.40
codegen_flags: <defaults>
</compile_context>

<pallas_src>
import functools

import jax
import jax.numpy as jnp
from jax.experimental import pallas as pl
from jax.experimental.pallas import tpu as pltpu

INPUT_SIZE = 784          # 28 * 28
DROP_P = 0.3
NEG_SLOPE = 0.2
MAX_TILE_B = 1024         # per-tile batch rows; ~8 MiB VMEM footprint


def _round_up(n, m):
    return (n + m - 1) // m * m


def _choose_tile_b(B):
    b8 = _round_up(B, 8)
    if b8 <= 512:
        return b8                                   # tiny batch: single tile
    # Aim for >= 4 grid tiles (v7x megacore sharding + DMA/compute overlap),
    # capped so each tile's double-buffered x stays well inside VMEM.
    return min(MAX_TILE_B, _round_up(pl.cdiv(B, 4), 8))


def _leaky_relu(x, slope=NEG_SLOPE):
    return jnp.where(x > 0, x, slope * x)


def disc_kernel(seed_ref,                      # scalar-prefetch (SMEM)
                x_ref,
                w1_ref, b1_ref,
                w2_ref, b2_ref,
                w3_ref, b3_ref,
                w4_ref, b4_ref,
                out_ref,
                *, training, drop_p):
    if training:
        # Per-tile seed mixing with a large odd constant so adjacent batch
        # tiles do not get correlated PRNG streams.
        pltpu.prng_seed(seed_ref[0] + pl.program_id(0) * jnp.int32(0x27D4EB2F))

    def dropout(h):
        bits = pltpu.prng_random_bits(h.shape)
        u = pltpu.bitcast(bits, jnp.uint32)         # zero-cost dtype guard
        # keep prob = 1 - drop_p (threshold rounding bias < 1e-9).  The
        # 1/(1-p) inverted-dropout scale is folded into the next layer's W.
        thresh = jnp.uint32(int(drop_p * (2.0 ** 32)))
        return jnp.where(u >= thresh, h, 0.0)

    def hidden(h_bf16, w_ref, b_ref):
        # bf16 MXU inputs, f32 accumulate + f32 bias, then bf16 element-wise.
        acc = jnp.dot(h_bf16, w_ref[...],
                      preferred_element_type=jnp.float32) + b_ref[...]
        h = _leaky_relu(acc.astype(jnp.bfloat16))
        if training:
            h = dropout(h)
        return h

    h = hidden(x_ref[...].astype(jnp.bfloat16), w1_ref, b1_ref)   # fc1
    h = hidden(h, w2_ref, b2_ref)                                 # fc2
    h = hidden(h, w3_ref, b3_ref)                                 # fc3
    # fc4 (no activation); compact out_dim-wide store.
    out = jnp.dot(h, w4_ref[...], preferred_element_type=jnp.float32) + b4_ref[...]
    out_ref[...] = out.astype(out_ref.dtype)


def discriminator_forward(x, params, *, training=False, seed=0):
    """x: (B, 1, 28, 28) or (B, 784), f32 (or bf16).  Returns (B, out_dim) f32."""
    x2 = x.reshape(-1, INPUT_SIZE)       # metadata-only reshape; no HBM copy
    B = x2.shape[0]
    w1, b1, w2, b2, w3, b3, w4, b4 = params
    out_dim = w4.shape[1]

    # Fold the inverted-dropout 1/(1-p) scale into downstream weights
    # (one-time, wrapper-side, ~0.25 MiB of weights -> effectively free).
    if training:
        s = 1.0 / (1.0 - DROP_P)
        w2, w3, w4 = w2 * s, w3 * s, w4 * s

    w1_b = w1.astype(jnp.bfloat16)
    w2_b = w2.astype(jnp.bfloat16)
    w3_b = w3.astype(jnp.bfloat16)
    w4_b = w4.astype(jnp.bfloat16)
    b1_f = b1.astype(jnp.float32)
    b2_f = b2.astype(jnp.float32)
    b3_f = b3.astype(jnp.float32)
    b4_f = b4.astype(jnp.float32)

    tile_b = _choose_tile_b(B)
    n_tiles = pl.cdiv(B, tile_b)         # ragged last tile masked by Pallas

    seed_arr = jnp.asarray([seed], dtype=jnp.int32)   # runtime SMEM scalar
    kernel = functools.partial(disc_kernel, training=training, drop_p=DROP_P)

    tile_map = lambda i, *_: (i, 0)      # index_maps also receive the seed ref
    resident = lambda i, *_: (0, 0)      # weights/biases stay VMEM-resident

    grid_spec = pltpu.PrefetchScalarGridSpec(
        num_scalar_prefetch=1,
        grid=(n_tiles,),
        in_specs=[
            pl.BlockSpec((tile_b, INPUT_SIZE), tile_map),   # 784 == full last dim
            pl.BlockSpec(w1_b.shape, resident),
            pl.BlockSpec(b1_f.shape, resident),
            pl.BlockSpec(w2_b.shape, resident),
            pl.BlockSpec(b2_f.shape, resident),
            pl.BlockSpec(w3_b.shape, resident),
            pl.BlockSpec(b3_f.shape, resident),
            pl.BlockSpec(w4_b.shape, resident),
            pl.BlockSpec(b4_f.shape, resident),
        ],
        out_specs=pl.BlockSpec((tile_b, out_dim), tile_map),
    )

    return pl.pallas_call(
        kernel,
        out_shape=jax.ShapeDtypeStruct((B, out_dim), jnp.float32),
        grid_spec=grid_spec,
        compiler_params=pltpu.CompilerParams(
            dimension_semantics=("parallel",),   # shard batch tiles across TCs
            vmem_limit_bytes=32 * 1024 * 1024),
    )(seed_arr, x2, w1_b, b1_f, w2_b, b2_f, w3_b, b3_f, w4_b, b4_f)


def init_params(key, input_size, hidden_dim, output_size):
    """Deterministic init mimicking torch.nn.Linear (U(-1/sqrt(fan_in), ...)).

    Weights are stored as (in_features, out_features)."""
    dims = [(input_size, hidden_dim * 4),
            (hidden_dim * 4, hidden_dim * 2),
            (hidden_dim * 2, hidden_dim),
            (hidden_dim, output_size)]
    params = []
    for (fan_in, fan_out) in dims:
        key, kw, kb = jax.random.split(key, 3)
        bound = 1.0 / jnp.sqrt(fan_in)
        w = jax.random.uniform(kw, (fan_in, fan_out), jnp.float32, -bound, bound)
        b = jax.random.uniform(kb, (1, fan_out), jnp.float32, -bound, bound)
        params += [w, b]
    return tuple(params)


def reference_forward(x, params):
    # Pure-JAX reference mirroring the kernel precision exactly (bf16 MXU
    # inputs, f32 accumulation/bias, bf16 element-wise); eval mode
    # (dropout = identity, as in torch's .eval()).
    x2 = x.reshape(-1, INPUT_SIZE).astype(jnp.float32)
    w1, b1, w2, b2, w3, b3, w4, b4 = params

    def hidden(h_bf16, w, b):
        acc = jnp.dot(h_bf16, w.astype(jnp.bfloat16),
                      preferred_element_type=jnp.float32) + b.astype(jnp.float32)
        return _leaky_relu(acc.astype(jnp.bfloat16))

    h = hidden(x2.astype(jnp.bfloat16), w1, b1)
    h = hidden(h, w2, b2)
    h = hidden(h, w3, b3)
    return jnp.dot(h, w4.astype(jnp.bfloat16),
                   preferred_element_type=jnp.float32) + b4.astype(jnp.float32)


if __name__ == "__main__":
    hidden_dim = 32
    output_size = 1
    batch = 8

    key = jax.random.PRNGKey(0)
    key, kx = jax.random.split(key)
    x = jax.random.normal(kx, (batch, 1, 28, 28), jnp.float32)  # NCHW like PyTorch

    params = init_params(key, INPUT_SIZE, hidden_dim, output_size)

    # Eval mode (dropout = identity), validated against the JAX reference.
    out = jax.block_until_ready(discriminator_forward(x, params, training=False))
    ref = reference_forward(x, params)

    assert out.shape == (batch, output_size)
    assert jnp.allclose(out, ref, atol=1e-2, rtol=1e-2), "mismatch vs JAX reference"

    # NOTE: training-mode dropout uses the TPU hardware PRNG
    # (pltpu.prng_seed / prng_random_bits), which only lowers on real TPU
    # hardware (no CPU/interpret path), so it is not exercised here.
    # TODO(synk): TPU-PRNG dropout will not bit-match torch's dropout RNG stream.

    print("KERNEL_OK")
</pallas_src>

<mosaic_0001>
module attributes {stable_mosaic.version = 11 : i64} {
  func.func @disc_kernel(%arg0: i32, %arg1: memref<1xi32, #tpu.memory_space<smem>>, %arg2: memref<8x784xf32, #tpu.memory_space<vmem>>, %arg3: memref<784x128xbf16, #tpu.memory_space<vmem>>, %arg4: memref<1x128xf32, #tpu.memory_space<vmem>>, %arg5: memref<128x64xbf16, #tpu.memory_space<vmem>>, %arg6: memref<1x64xf32, #tpu.memory_space<vmem>>, %arg7: memref<64x32xbf16, #tpu.memory_space<vmem>>, %arg8: memref<1x32xf32, #tpu.memory_space<vmem>>, %arg9: memref<32x1xbf16, #tpu.memory_space<vmem>>, %arg10: memref<1x1xf32, #tpu.memory_space<vmem>>, %arg11: memref<8x1xf32, #tpu.memory_space<vmem>>) attributes {dimension_semantics = [#tpu.dimension_semantics<parallel>], iteration_bounds = array<i64: 1>, scalar_prefetch = 1 : i64, scratch_operands = 0 : i64, tpu.core_type = #tpu.core_type<tc>, window_params = [{transform_indices = @transform_0, window_bounds = array<i64: 8, 784>}, {pipeline_mode = #tpu.pipeline_mode<synchronous>, transform_indices = @transform_1, window_bounds = array<i64: 784, 128>}, {pipeline_mode = #tpu.pipeline_mode<synchronous>, transform_indices = @transform_2, window_bounds = array<i64: 1, 128>}, {pipeline_mode = #tpu.pipeline_mode<synchronous>, transform_indices = @transform_3, window_bounds = array<i64: 128, 64>}, {pipeline_mode = #tpu.pipeline_mode<synchronous>, transform_indices = @transform_4, window_bounds = array<i64: 1, 64>}, {pipeline_mode = #tpu.pipeline_mode<synchronous>, transform_indices = @transform_5, window_bounds = array<i64: 64, 32>}, {pipeline_mode = #tpu.pipeline_mode<synchronous>, transform_indices = @transform_6, window_bounds = array<i64: 1, 32>}, {pipeline_mode = #tpu.pipeline_mode<synchronous>, transform_indices = @transform_7, window_bounds = array<i64: 32, 1>}, {pipeline_mode = #tpu.pipeline_mode<synchronous>, transform_indices = @transform_8, window_bounds = array<i64: 1, 1>}, {transform_indices = @transform_9, window_bounds = array<i64: 8, 1>}]} {
    %c0 = arith.constant 0 : index
    %c0_0 = arith.constant 0 : index
    %0 = vector.load %arg2[%c0, %c0_0] : memref<8x784xf32, #tpu.memory_space<vmem>>, vector<8x784xf32>
    %1 = arith.truncf %0 : vector<8x784xf32> to vector<8x784xbf16>
    %c0_1 = arith.constant 0 : index
    %c0_2 = arith.constant 0 : index
    %2 = vector.load %arg3[%c0_1, %c0_2] : memref<784x128xbf16, #tpu.memory_space<vmem>>, vector<784x128xbf16>
    %cst = arith.constant dense<0.000000e+00> : vector<8x128xf32>
    %3 = tpu.matmul %1, %2, %cst {dimension_numbers = #tpu.dot_dimension_numbers<[1], [0], [0], [1], [0, 0, 1, 1], [], []>} : vector<8x784xbf16>, vector<784x128xbf16>, vector<8x128xf32> -> vector<8x128xf32>
    %c0_3 = arith.constant 0 : index
    %c0_4 = arith.constant 0 : index
    %4 = vector.load %arg4[%c0_3, %c0_4] : memref<1x128xf32, #tpu.memory_space<vmem>>, vector<1x128xf32>
    %5 = vector.broadcast %4 : vector<1x128xf32> to vector<8x128xf32>
    %6 = arith.addf %3, %5 : vector<8x128xf32>
    %7 = arith.truncf %6 : vector<8x128xf32> to vector<8x128xbf16>
    %cst_5 = arith.constant 0.000000e+00 : bf16
    %8 = vector.broadcast %cst_5 : bf16 to vector<8x128xbf16>
    %9 = arith.cmpf ogt, %7, %8 : vector<8x128xbf16>
    %cst_6 = arith.constant 2.001950e-01 : bf16
    %10 = vector.broadcast %cst_6 : bf16 to vector<8x128xbf16>
    %11 = arith.mulf %10, %7 : vector<8x128xbf16>
    %12 = arith.select %9, %7, %11 : vector<8x128xi1>, vector<8x128xbf16>
    %c0_7 = arith.constant 0 : index
    %c0_8 = arith.constant 0 : index
    %13 = vector.load %arg5[%c0_7, %c0_8] : memref<128x64xbf16, #tpu.memory_space<vmem>>, vector<128x64xbf16>
    %cst_9 = arith.constant dense<0.000000e+00> : vector<8x64xf32>
    %14 = tpu.matmul %12, %13, %cst_9 {dimension_numbers = #tpu.dot_dimension_numbers<[1], [0], [0], [1], [0, 0, 1, 1], [], []>} : vector<8x128xbf16>, vector<128x64xbf16>, vector<8x64xf32> -> vector<8x64xf32>
    %c0_10 = arith.constant 0 : index
    %c0_11 = arith.constant 0 : index
    %15 = vector.load %arg6[%c0_10, %c0_11] : memref<1x64xf32, #tpu.memory_space<vmem>>, vector<1x64xf32>
    %16 = vector.broadcast %15 : vector<1x64xf32> to vector<8x64xf32>
    %17 = arith.addf %14, %16 : vector<8x64xf32>
    %18 = arith.truncf %17 : vector<8x64xf32> to vector<8x64xbf16>
    %cst_12 = arith.constant 0.000000e+00 : bf16
    %19 = vector.broadcast %cst_12 : bf16 to vector<8x64xbf16>
    %20 = arith.cmpf ogt, %18, %19 : vector<8x64xbf16>
    %cst_13 = arith.constant 2.001950e-01 : bf16
    %21 = vector.broadcast %cst_13 : bf16 to vector<8x64xbf16>
    %22 = arith.mulf %21, %18 : vector<8x64xbf16>
    %23 = arith.select %20, %18, %22 : vector<8x64xi1>, vector<8x64xbf16>
    %c0_14 = arith.constant 0 : index
    %c0_15 = arith.constant 0 : index
    %24 = vector.load %arg7[%c0_14, %c0_15] : memref<64x32xbf16, #tpu.memory_space<vmem>>, vector<64x32xbf16>
    %cst_16 = arith.constant dense<0.000000e+00> : vector<8x32xf32>
    %25 = tpu.matmul %23, %24, %cst_16 {dimension_numbers = #tpu.dot_dimension_numbers<[1], [0], [0], [1], [0, 0, 1, 1], [], []>} : vector<8x64xbf16>, vector<64x32xbf16>, vector<8x32xf32> -> vector<8x32xf32>
    %c0_17 = arith.constant 0 : index
    %c0_18 = arith.constant 0 : index
    %26 = vector.load %arg8[%c0_17, %c0_18] : memref<1x32xf32, #tpu.memory_space<vmem>>, vector<1x32xf32>
    %27 = vector.broadcast %26 : vector<1x32xf32> to vector<8x32xf32>
    %28 = arith.addf %25, %27 : vector<8x32xf32>
    %29 = arith.truncf %28 : vector<8x32xf32> to vector<8x32xbf16>
    %cst_19 = arith.constant 0.000000e+00 : bf16
    %30 = vector.broadcast %cst_19 : bf16 to vector<8x32xbf16>
    %31 = arith.cmpf ogt, %29, %30 : vector<8x32xbf16>
    %cst_20 = arith.constant 2.001950e-01 : bf16
    %32 = vector.broadcast %cst_20 : bf16 to vector<8x32xbf16>
    %33 = arith.mulf %32, %29 : vector<8x32xbf16>
    %34 = arith.select %31, %29, %33 : vector<8x32xi1>, vector<8x32xbf16>
    %c0_21 = arith.constant 0 : index
    %c0_22 = arith.constant 0 : index
    %35 = vector.load %arg9[%c0_21, %c0_22] : memref<32x1xbf16, #tpu.memory_space<vmem>>, vector<32x1xbf16>
    %cst_23 = arith.constant dense<0.000000e+00> : vector<8x1xf32>
    %36 = tpu.matmul %34, %35, %cst_23 {dimension_numbers = #tpu.dot_dimension_numbers<[1], [0], [0], [1], [0, 0, 1, 1], [], []>} : vector<8x32xbf16>, vector<32x1xbf16>, vector<8x1xf32> -> vector<8x1xf32>
    %c0_24 = arith.constant 0 : index
    %c0_25 = arith.constant 0 : index
    %37 = vector.load %arg10[%c0_24, %c0_25] : memref<1x1xf32, #tpu.memory_space<vmem>>, vector<1x1xf32>
    %38 = vector.broadcast %37 : vector<1x1xf32> to vector<8x1xf32>
    %39 = arith.addf %36, %38 : vector<8x1xf32>
    %c0_26 = arith.constant 0 : index
    %c0_27 = arith.constant 0 : index
    %40 = vector.load %arg11[%c0_26, %c0_27] : memref<8x1xf32, #tpu.memory_space<vmem>>, vector<8x1xf32>
    tpu.vector_store %arg11[%c0_26, %c0_27], %39 {strides = array<i32>} : memref<8x1xf32, #tpu.memory_space<vmem>>, vector<8x1xf32>,
    return
  }
  func.func @transform_0(%arg0: i32, %arg1: memref<1xi32, #tpu.memory_space<smem>>) -> (i32, i32) {
    %c0_i32 = arith.constant 0 : i32
    %c0_i32_0 = arith.constant 0 : i32
    return %arg0, %c0_i32 : i32, i32
  }
  func.func @transform_1(%arg0: i32, %arg1: memref<1xi32, #tpu.memory_space<smem>>) -> (i32, i32) {
    %c0_i32 = arith.constant 0 : i32
    %c0_i32_0 = arith.constant 0 : i32
    %c0_i32_1 = arith.constant 0 : i32
    return %c0_i32, %c0_i32_0 : i32, i32
  }
  func.func @transform_2(%arg0: i32, %arg1: memref<1xi32, #tpu.memory_space<smem>>) -> (i32, i32) {
    %c0_i32 = arith.constant 0 : i32
    %c0_i32_0 = arith.constant 0 : i32
    %c0_i32_1 = arith.constant 0 : i32
    return %c0_i32, %c0_i32_0 : i32, i32
  }
  func.func @transform_3(%arg0: i32, %arg1: memref<1xi32, #tpu.memory_space<smem>>) -> (i32, i32) {
    %c0_i32 = arith.constant 0 : i32
    %c0_i32_0 = arith.constant 0 : i32
    %c0_i32_1 = arith.constant 0 : i32
    return %c0_i32, %c0_i32_0 : i32, i32
  }
  func.func @transform_4(%arg0: i32, %arg1: memref<1xi32, #tpu.memory_space<smem>>) -> (i32, i32) {
    %c0_i32 = arith.constant 0 : i32
    %c0_i32_0 = arith.constant 0 : i32
    %c0_i32_1 = arith.constant 0 : i32
    return %c0_i32, %c0_i32_0 : i32, i32
  }
  func.func @transform_5(%arg0: i32, %arg1: memref<1xi32, #tpu.memory_space<smem>>) -> (i32, i32) {
    %c0_i32 = arith.constant 0 : i32
    %c0_i32_0 = arith.constant 0 : i32
    %c0_i32_1 = arith.constant 0 : i32
    return %c0_i32, %c0_i32_0 : i32, i32
  }
  func.func @transform_6(%arg0: i32, %arg1: memref<1xi32, #tpu.memory_space<smem>>) -> (i32, i32) {
    %c0_i32 = arith.constant 0 : i32
    %c0_i32_0 = arith.constant 0 : i32
    %c0_i32_1 = arith.constant 0 : i32
    return %c0_i32, %c0_i32_0 : i32, i32
  }
  func.func @transform_7(%arg0: i32, %arg1: memref<1xi32, #tpu.memory_space<smem>>) -> (i32, i32) {
    %c0_i32 = arith.constant 0 : i32
    %c0_i32_0 = arith.constant 0 : i32
    %c0_i32_1 = arith.constant 0 : i32
    return %c0_i32, %c0_i32_0 : i32, i32
  }
  func.func @transform_8(%arg0: i32, %arg1: memref<1xi32, #tpu.memory_space<smem>>) -> (i32, i32) {
    %c0_i32 = arith.constant 0 : i32
    %c0_i32_0 = arith.constant 0 : i32
    %c0_i32_1 = arith.constant 0 : i32
    return %c0_i32, %c0_i32_0 : i32, i32
  }
  func.func @transform_9(%arg0: i32, %arg1: memref<1xi32, #tpu.memory_space<smem>>) -> (i32, i32) {
    %c0_i32 = arith.constant 0 : i32
    %c0_i32_0 = arith.constant 0 : i32
    return %arg0, %c0_i32 : i32, i32
  }
}

</mosaic_0001>

<bundles_post_ra>
// kernel: tpu_custom_call.1
= control target key start
LH: loop header
LB: loop body
LE: loop exit
PB: predicated region body
PF: predicated region fallthrough
CT: control target
= control target key end

     0   :  { %s1375_s0 = inlined_call_operand.<no memory space> [shape: s32[1], index: 0, kind: input, shape index: {}]   ;;  %s1376_s1 = inlined_call_operand.vmem [shape: f32[8,784], index: 1, kind: input, shape index: {}]   ;;  %s1377_s2 = inlined_call_operand.hbm [shape: bf16[784,128], index: 2, kind: input, shape index: {}]   ;;  %s1378_s3 = inlined_call_operand.vmem [shape: f32[1,128], index: 3, kind: input, shape index: {}]   ;;  %s1379_s4 = inlined_call_operand.vmem [shape: bf16[128,64], index: 4, kind: input, shape index: {}]   ;;  %s1380_s5 = inlined_call_operand.vmem [shape: f32[1,64], index: 5, kind: input, shape index: {}]   ;;  %s1381_s6 = inlined_call_operand.vmem [shape: bf16[64,32], index: 6, kind: input, shape index: {}]   ;;  %s1382_s7 = inlined_call_operand.vmem [shape: f32[1,32], index: 7, kind: input, shape index: {}]   ;;  %s1383_s8 = inlined_call_operand.vmem [shape: bf16[32,1], index: 8, kind: input, shape index: {}]   ;;  %s1384_s9 = inlined_call_operand.<no memory space> [shape: f32[1,1], index: 9, kind: input, shape index: {}]   ;;  %s1385_s10 = inlined_call_operand.vmem [shape: f32[8,1], index: 10, kind: output, shape index: {}]  }
   0x1   :  { %v16_v0 = vstv %s1384_s9 }
   0x2   :  { %17 = vst [vmem:[#allocation4] sm:$0x1] %v16_v0 }
   0x3   :  { %18 = vsyncpa [#allocation6], 0  ;;  %s1202_s14 = smov [#allocation5]   ;;  %s1178_s18 = scalar_lea.hbm %s1377_s2, 6272 }
   0x4   :  { %s26_s15 = sshll.u32 %s1202_s14, 4  ;;  %p1179_p0 = scmp.ne.s32.totalorder %s1377_s2, %s1178_s18  ;;  %s27_s15 = int_to_ptr.vmem [resolvable:$true] %s26_s15 }
   0x5   :  { %p1182_p1 = scmp.lt.u32.totalorder %s1178_s18, %s1377_s2 }
   0x7   :  { %p1184_p2 = pnand %p1182_p1, %p1179_p0 }
   0x9   :  { %1187 = shalt.err (!%p1184_p2)
}
   0xa   :  { %s1188_s9 = scalar_lea.vmem %s27_s15, 6272  ;;  %p1193_p4 = scmp.lt.s32.totalorder %s27_s15, %s27_s15 }
   0xb   :  { %p1189_p3 = scmp.ne.s32.totalorder %s27_s15, %s1188_s9  ;;  %p1194_p5 = scmp.lt.s32.totalorder %s1188_s9, %s1188_s9 }
   0xd   :  { %p1195_p6 = por %p1194_p5, %p1193_p4 }
   0xf   :  { %p1196_p7 = pnand %p1195_p6, %p1189_p3 }
  0x11   :  { %1199 = shalt.err (!%p1196_p7)
}
  0x12   :  { %s1203_s23 = smov 64   ;;  %s1204_s24 = smov 4  }
  0x13   :  { %32 = dma.hbm_to_vmem [thread:$0]  %s1377_s2, 6272, %s27_s15, [#allocation6], %s1203_s23, %s1203_s23, %s1204_s24  }
  0x14   :  { %1200 = dma.done.wait [#allocation6], 6272  }
  0x15   :  { %1201 = vsyncadd [#allocation6], 4294961024  ;;  %v1115_v1 = vld [vmem:[#allocation5 + $0x40] sm:$0xff]   ;;  %v1119_v5 = vld [vmem:[#allocation5 + $0x48] sm:$0xff]   ;;  %v1205_v45 = vmov 0.0   ;;  %vm1206_vm0 = vmmov 0  }
  0x16   :  { %v1116_v2 = vld [vmem:[#allocation5] sm:$0xff]   ;;  %979 = vmatprep.subr.bf16.mxu0 %v1115_v1  ;;  %v1120_v6 = vld [vmem:[#allocation5 + $0x8] sm:$0xff]   ;;  %v1123_v9 = vld [vmem:[#allocation5 + $0x50] sm:$0xff]   ;;  %vm465_vm1 = vcmask 130048   ;;  %vm787_vm4 = vcmask 523264   ;;  %vm858_vm6 = vcmask 261120  }
  0x17   :  { %v1117_v3 = vld [vmem:[#allocation5 + $0xc0] sm:$0xff]   ;;  %980 = vmatpush3.bf16.msra.mxu0 %v1116_v2  ;;  %v1121_v7 = vld [vmem:[#allocation5 + $0xc8] sm:$0xff]   ;;  %v1124_v10 = vld [vmem:[#allocation5 + $0x10] sm:$0xff]   ;;  %vm902_vm7 = vcmask 7168  }
  0x18   :  { %v1118_v4 = vld [vmem:[#allocation5 + $0x80] sm:$0xff]   ;;  %1001 = vmatprep.subr.bf16.mxu1 %v1117_v3  ;;  %981 = vmatprep.subr.bf16.mxu0 %v1119_v5  ;;  %v1122_v8 = vld [vmem:[#allocation5 + $0x88] sm:$0xff]   ;;  %v1125_v11 = vld [vmem:[#allocation5 + $0xd0] sm:$0xff]  }
  0x19   :  { %1002 = vmatpush3.bf16.msra.mxu1 %v1118_v4  ;;  %v1126_v12 = vld [vmem:[#allocation5 + $0x90] sm:$0xff]   ;;  %v1127_v13 = vld [vmem:[#allocation5 + $0x58] sm:$0xff]   ;;  %v1131_v17 = vld [vmem:[#allocation5 + $0x60] sm:$0xff]  }
  0x1a   :  { %1003 = vmatprep.subr.bf16.mxu1 %v1121_v7  ;;  %v1128_v14 = vld [vmem:[#allocation5 + $0x18] sm:$0xff]   ;;  %v1132_v18 = vld [vmem:[#allocation5 + $0x20] sm:$0xff]   ;;  %v1135_v21 = vld [vmem:[#allocation5 + $0x68] sm:$0xff]  }
  0x1b   :  { %982 = vmatpush3.bf16.msra.mxu0 %v1120_v6  ;;  %v1129_v15 = vld [vmem:[#allocation5 + $0xd8] sm:$0xff]   ;;  %v1133_v19 = vld [vmem:[#allocation5 + $0xe0] sm:$0xff]   ;;  %v1136_v22 = vld [vmem:[#allocation5 + $0x28] sm:$0xff]  }
  0x1c   :  { %983 = vmatprep.subr.bf16.mxu0 %v1123_v9  ;;  %v1130_v16 = vld [vmem:[#allocation5 + $0x98] sm:$0xff]   ;;  %v1134_v20 = vld [vmem:[#allocation5 + $0xa0] sm:$0xff]   ;;  %v1137_v23 = vld [vmem:[#allocation5 + $0xe8] sm:$0xff]  }
  0x1d   :  { %1004 = vmatpush3.bf16.msra.mxu1 %v1122_v8  ;;  %v1138_v24 = vld [vmem:[#allocation5 + $0xa8] sm:$0xff]   ;;  %v1139_v25 = vld [vmem:[#allocation5 + $0x70] sm:$0xff]   ;;  %v1143_v29 = vld [vmem:[#allocation5 + $0x78] sm:$0xff]  }
  0x1e   :  { %1005 = vmatprep.subr.bf16.mxu1 %v1125_v11  ;;  %v1140_v26 = vld [vmem:[#allocation5 + $0x30] sm:$0xff]   ;;  %v1144_v30 = vld [vmem:[#allocation5 + $0x38] sm:$0xff]   ;;  %v53_v32 = vld [vmem:[%s1376_s1 + $0x8] sm:$0xff] }
  0x1f   :  { %984 = vmatpush3.bf16.msra.mxu0 %v1124_v10  ;;  %v1141_v27 = vld [vmem:[#allocation5 + $0xf0] sm:$0xff]   ;;  %v1145_v31 = vld [vmem:[#allocation5 + $0xf8] sm:$0xff]   ;;  %v60_v33 = vpack.c.bf16 %v53_v32, %v53_v32  ;;  %v1147_v37 = vld [vmem:[#allocation5 + $0x140] sm:$0xff]  }
  0x20   :  { %985 = vmatprep.subr.bf16.mxu0 %v1127_v13  ;;  %v1142_v28 = vld [vmem:[#allocation5 + $0xb0] sm:$0xff]   ;;  %v1146_v34 = vld [vmem:[#allocation5 + $0xb8] sm:$0xff]   ;;  %v1148_v40 = vld [vmem:[#allocation5 + $0x100] sm:$0xff]  }
  0x21   :  { %1006 = vmatpush3.bf16.msra.mxu1 %v1126_v12  ;;  %v52_v35 = vld [vmem:[%s1376_s1] sm:$0xff]  ;;  %v55_v38 = vld [vmem:[%s1376_s1 + $0x18] sm:$0xff]  ;;  %501 = vmatprep.mubr.bf16.mxu0 %v60_v33  ;;  %v54_v41 = vld [vmem:[%s1376_s1 + $0x10] sm:$0xff] }
  0x22   :  { %1007 = vmatprep.subr.bf16.mxu1 %v1129_v15  ;;  %v59_v36 = vpack.c.bf16 %v52_v35, %v52_v35  ;;  %v62_v39 = vpack.c.bf16 %v55_v38, %v55_v38  ;;  %v61_v42 = vpack.c.bf16 %v54_v41, %v54_v41  ;;  %v1149_v43 = vld [vmem:[#allocation5 + $0x148] sm:$0xff]   ;;  %v1151_v46 = vld [vmem:[#allocation5 + $0x150] sm:$0xff]   ;;  %v1153_v48 = vld [vmem:[#allocation5 + $0x158] sm:$0xff]  }
  0x23   :  { %986 = vmatpush3.bf16.msra.mxu0 %v1128_v14  ;;  %v1150_v44 = vld [vmem:[#allocation5 + $0x108] sm:$0xff]   ;;  %v1152_v47 = vld [vmem:[#allocation5 + $0x110] sm:$0xff]   ;;  %v1154_v49 = vld [vmem:[#allocation5 + $0x118] sm:$0xff]  }
  0x24   :  { %987 = vmatprep.subr.bf16.mxu0 %v1131_v17  ;;  %541 = vmatprep.mubr.bf16.mxu1 %v62_v39  ;;  %v1155_v50 = vld [vmem:[#allocation5 + $0x160] sm:$0xff]   ;;  %v1157_v52 = vld [vmem:[#allocation5 + $0x168] sm:$0xff]   ;;  %v1159_v56 = vld [vmem:[#allocation5 + $0x170] sm:$0xff]  }
  0x25   :  { %1008 = vmatpush3.bf16.msra.mxu1 %v1130_v16  ;;  %v1156_v51 = vld [vmem:[#allocation5 + $0x120] sm:$0xff]   ;;  %v1158_v53 = vld [vmem:[#allocation5 + $0x128] sm:$0xff]   ;;  %v1160_v60 = vld [vmem:[#allocation5 + $0x130] sm:$0xff]  }
  0x26   :  { %1009 = vmatprep.subr.bf16.mxu1 %v1133_v19  ;;  %v1163_v54 = vld [vmem:[#allocation5 + $0x180] sm:$0xff]   ;;  %v58_v58 = vld [vmem:[%s1376_s1 + $0x30] sm:$0xff]  ;;  %v1161_v61 = vld [vmem:[#allocation5 + $0x178] sm:$0xff]  }
  0x27   :  { %988 = vmatpush3.bf16.msra.mxu0 %v1132_v18  ;;  %v57_v55 = vld [vmem:[%s1376_s1 + $0x28] sm:$0xff]  ;;  %v65_v59 = vpack.c.bf16 %v58_v58, %v58_v58  ;;  %v1162_v62 = vld [vmem:[#allocation5 + $0x138] sm:$0xff]   ;;  %v1166_v3 = vld [vmem:[%s1379_s4 + $0x10] sm:$0xff]  }
  0x28   :  { %989 = vmatprep.subr.bf16.mxu0 %v1135_v21  ;;  %v64_v57 = vpack.c.bf16 %v57_v55, %v57_v55  ;;  %v56_v63 = vld [vmem:[%s1376_s1 + $0x20] sm:$0xff]  ;;  %v1165_v2 = vld [vmem:[%s1379_s4 + $0x8] sm:$0xff]   ;;  %v1167_v4 = vld [vmem:[%s1379_s4 + $0x18] sm:$0xff]  }
  0x29   :  { %1010 = vmatpush3.bf16.msra.mxu1 %v1134_v20  ;;  %v63_v0 = vpack.c.bf16 %v56_v63, %v56_v63  ;;  %v1164_v1 = vld [vmem:[%s1379_s4] sm:$0xff]   ;;  %v1169_v6 = vld [vmem:[%s1379_s4 + $0x28] sm:$0xff]   ;;  %v1170_v7 = vld [vmem:[%s1379_s4 + $0x30] sm:$0xff]  }
  0x2a   :  { %1011 = vmatprep.subr.bf16.mxu1 %v1137_v23  ;;  %v1168_v5 = vld [vmem:[%s1379_s4 + $0x20] sm:$0xff]   ;;  %v1171_v8 = vld [vmem:[%s1379_s4 + $0x38] sm:$0xff]   ;;  %v1173_v10 = vld [vmem:[%s1381_s6 + $0x8] sm:$0xff]  }
  0x2b   :  { %990 = vmatpush3.bf16.msra.mxu0 %v1136_v22  ;;  %v1172_v9 = vld [vmem:[%s1381_s6] sm:$0xff]   ;;  %v1174_v38 = vld [vmem:[%s1381_s6 + $0x10] sm:$0xff]   ;;  %v1175_v39 = vld [vmem:[%s1381_s6 + $0x18] sm:$0xff]  }
  0x2c   :  { %991 = vmatprep.subr.bf16.mxu0 %v1139_v25  ;;  %v909_v12 = vld [vmem:[%s1378_s3] ss:$0 sm:$0xff] }
  0x2d   :  { %1012 = vmatpush3.bf16.msra.mxu1 %v1138_v24 }
  0x2e   :  { %1013 = vmatprep.subr.bf16.mxu1 %v1141_v27 }
  0x2f   :  { %992 = vmatpush3.bf16.msra.mxu0 %v1140_v26 }
  0x30   :  { %993 = vmatprep.subr.bf16.mxu0 %v1143_v29 }
  0x31   :  { %1014 = vmatpush3.bf16.msra.mxu1 %v1142_v28 }
  0x32   :  { %1015 = vmatprep.subr.bf16.mxu1 %v1145_v31 }
  0x33   :  { %994 = vmatpush3.bf16.msra.mxu0 %v1144_v30 }
  0x34   :  { %1023 = vmatprep.subr.bf16.mxu0 %v1147_v37 }
  0x35   :  { %1016 = vmatpush3.bf16.msra.mxu1 %v1146_v34 }
  0x36   :  { %502 = vmatmul.mubr.bf16.vlgmr.msra.gmra.mrb[0].mxu0 %v59_v36  ;;  %1064 = vmatprep.subr.bf16.mxu1 %v1205_v45 }
  0x37   :  { %1024 = vmatpush3.bf16.msra.mxu0 %v1148_v40  ;;  %581 = vmatprep.mubr.bf16.mxu0 %v64_v57  ;;  %v960_v40 = vld [vmem:[%s1380_s5] ss:$0 sm:$0xff] }
  0x38   :  { %542 = vmatmul.mubr.bf16.vlgmr.msra.gmra.mrb[0].mxu1 %v61_v42  ;;  %1025 = vmatprep.subr.bf16.mxu0 %v1149_v43 }
  0x39   :  { %1066 = vmatprep.mubr.msk.bf16.mxu1 %vm1206_vm0, %v1205_v45  ;;  %1065 = vmatpush3.bf16.msra.mxu1 %v1163_v54 }
  0x3a   :  { %1070 = vmatprep.subr.bf16.mxu1 %v1205_v45 }
  0x3b   :  { %1026 = vmatpush3.bf16.msra.mxu0 %v1150_v44 }
  0x3c   :  { %1027 = vmatprep.subr.bf16.mxu0 %v1151_v46 }
  0x3f   :  { %1028 = vmatpush3.bf16.msra.mxu0 %v1152_v47 }
  0x40   :  { %1029 = vmatprep.subr.bf16.mxu0 %v1153_v48  ;;  %1067 = vmatmul.mubr.msk.bf16.vlgmr.msra.gmra.mrb[4].mxu1 %vm465_vm1, %v65_v59 }
  0x41   :  { %1086 = vmatprep.mubr.msk.bf16.mxu1 %vm1206_vm0, %v1205_v45  ;;  %1071 = vmatpush3.bf16.msra.mxu1 %v1164_v1 }
  0x42   :  { %1072 = vmatprep.subr.bf16.mxu1 %v1205_v45 }
  0x43   :  { %1030 = vmatpush3.bf16.msra.mxu0 %v1154_v49 }
  0x44   :  { %1031 = vmatprep.subr.bf16.mxu0 %v1155_v50  ;;  %v1176_v50 = vld [vmem:[%s1383_s8] sm:$0xff]  }
  0x45   :  { %1073 = vmatpush3.bf16.msra.mxu1 %v1165_v2 }
  0x46   :  { %1074 = vmatprep.subr.bf16.mxu1 %v1205_v45 }
  0x47   :  { %1032 = vmatpush3.bf16.msra.mxu0 %v1156_v51  ;;  %v1177_v51 = vld [vmem:[%s1383_s8 + $0x8] sm:$0xff]  }
  0x48   :  { %1033 = vmatprep.subr.bf16.mxu0 %v1157_v52  ;;  %v969_v52 = vld [vmem:[%s1382_s7] ss:$0 sm:$0xff] }
  0x49   :  { %1075 = vmatpush3.bf16.msra.mxu1 %v1166_v3 }
  0x4a   :  { %1076 = vmatprep.subr.bf16.mxu1 %v1205_v45 }
  0x4b   :  { %1034 = vmatpush3.bf16.msra.mxu0 %v1158_v53 }
  0x4c   :  { %1035 = vmatprep.subr.bf16.mxu0 %v1159_v56 }
  0x4d   :  { %1077 = vmatpush3.bf16.msra.mxu1 %v1167_v4 }
  0x4e   :  { %1078 = vmatprep.subr.bf16.mxu1 %v1205_v45 }
  0x4f   :  { %1036 = vmatpush3.bf16.msra.mxu0 %v1160_v60 }
  0x50   :  { %1037 = vmatprep.subr.bf16.mxu0 %v1161_v61 }
  0x51   :  { %1079 = vmatpush3.bf16.msra.mxu1 %v1168_v5 }
  0x52   :  { %1080 = vmatprep.subr.bf16.mxu1 %v1205_v45 }
  0x53   :  { %1038 = vmatpush3.bf16.msra.mxu0 %v1162_v62 }
  0x54   :  { %1090 = vmatprep.subr.bf16.mxu0 %v1205_v45 }
  0x55   :  { %1081 = vmatpush3.bf16.msra.mxu1 %v1169_v6 }
  0x56   :  { %582 = vmatmul.mubr.bf16.vlgmr.msra.gmra.mrb[4].mxu0 %v63_v0  ;;  %1082 = vmatprep.subr.bf16.mxu1 %v1205_v45 }
  0x57   :  { %1098 = vmatprep.mubr.msk.bf16.mxu0 %vm1206_vm0, %v1205_v45  ;;  %1091 = vmatpush3.bf16.msra.mxu0 %v1172_v9 }
  0x58   :  { %1092 = vmatprep.subr.bf16.mxu0 %v1205_v45 }
  0x59   :  { %1083 = vmatpush3.bf16.msra.mxu1 %v1170_v7 }
  0x5a   :  { %1084 = vmatprep.subr.bf16.mxu1 %v1205_v45 }
  0x5b   :  { %1093 = vmatpush3.bf16.msra.mxu0 %v1173_v10 }
  0x5c   :  { %1094 = vmatprep.subr.bf16.mxu0 %v1205_v45 }
  0x5d   :  { %1085 = vmatpush3.bf16.msra.mxu1 %v1171_v8 }
  0x5e   :  { %1102 = vmatprep.subr.bf16.mxu1 %v1205_v45 }
  0x5f   :  { %1095 = vmatpush3.bf16.msra.mxu0 %v1174_v38 }
  0x60   :  { %1096 = vmatprep.subr.bf16.mxu0 %v1205_v45 }
  0x63   :  { %1097 = vmatpush3.bf16.msra.mxu0 %v1175_v39 }
 0x109   :  { %v995_v11 = vpop.f32.mrb[0].mxu0 }
 0x10a   :  { %v996_v13 = vpop.f32.mrb[1].mxu0 }
 0x10b   :  { %v997_v14 = vadd.f32 %v996_v13, %v995_v11  ;;  %v998_v15 = vpop.f32.mrb[2].mxu0  ;;  %v1017_v16 = vpop.f32.mrb[0].mxu1 }
 0x10c   :  { %v999_v17 = vpop.f32.mrb[3].mxu0  ;;  %v1018_v19 = vpop.f32.mrb[1].mxu1 }
 0x10d   :  { %v504_v18 = vadd.f32 %v997_v14, %v909_v12  ;;  %v1019_v20 = vadd.f32 %v1018_v19, %v1017_v16  ;;  %v1020_v21 = vpop.f32.mrb[2].mxu1 }
 0x10e   :  { %v1021_v22 = vpop.f32.mrb[3].mxu1 }
 0x10f   :  { %v544_v23 = vadd.f32 %v1019_v20, %v504_v18 }
 0x113   :  { %v623_v24 = vpop.f32.mrb[4].mxu1 }
 0x114   :  { %v1068_v25 = vpop.f32.mrb[5].mxu1 }
 0x115   :  { %v626_v26 = vpop.f32.mrb[6].mxu1 }
 0x116   :  { %v1069_v27 = vpop.f32.mrb[7].mxu1 }
 0x129   :  { %v1039_v28 = vpop.f32.mrb[4].mxu0 }
 0x12a   :  { %v1040_v29 = vpop.f32.mrb[5].mxu0 }
 0x12b   :  { %v1041_v30 = vadd.f32 %v1040_v29, %v1039_v28  ;;  %v1042_v31 = vpop.f32.mrb[6].mxu0 }
 0x12c   :  { %v1043_v32 = vpop.f32.mrb[7].mxu0 }
 0x12d   :  { %v584_v33 = vadd.f32 %v1041_v30, %v544_v23 }
 0x12f   :  { %v624_v34 = vadd.f32 %v623_v24, %v584_v33 }
 0x131   :  { %v629_v35 = vpack.c.bf16 %v624_v34, %v624_v34 }
 0x133   :  { %vm630_vm2 = vcmp.gt.bf16.partialorder %v629_v35, 0  ;;  %v631_v36 = vmul.bf16 1045249613, %v629_v35 }
 0x135   :  { %v632_v37 = vsel %vm630_vm2, %v629_v35, %v631_v36 }
 0x136   :  { %1087 = vmatmul.mubr.bf16.vlgmr.msra.gmra.mrb[8].mxu1 %v632_v37 }
 0x137   :  { %1106 = vmatprep.mubr.msk.bf16.mxu1 %vm1206_vm0, %v1205_v45  ;;  %1103 = vmatpush3.bf16.msra.mxu1 %v1176_v50 }
 0x138   :  { %1104 = vmatprep.subr.bf16.mxu1 %v1205_v45  ;;  %v975_v45 = vld [vmem:[#allocation4] ss:$0 sm:$0xff] }
 0x13b   :  { %1105 = vmatpush3.bf16.msra.mxu1 %v1177_v51 }
 0x209   :  { %v738_v41 = vpop.f32.mrb[8].mxu1 }
 0x20a   :  { %v739_v42 = vadd.f32 %v960_v40, %v738_v41  ;;  %v1088_v43 = vpop.f32.mrb[9].mxu1 }
 0x20b   :  { %v741_v44 = vpop.f32.mrb[10].mxu1 }
 0x20c   :  { %v744_v46 = vpack.c.bf16 %v739_v42, %v739_v42  ;;  %v1089_v47 = vpop.f32.mrb[11].mxu1 }
 0x20e   :  { %vm745_vm3 = vcmp.gt.bf16.partialorder %v744_v46, 0  ;;  %v746_v48 = vmul.bf16 1045249613, %v744_v46 }
 0x210   :  { %v747_v49 = vsel %vm745_vm3, %v744_v46, %v746_v48 }
 0x211   :  { %1099 = vmatmul.mubr.msk.bf16.vlgmr.msra.gmra.mrb[8].mxu0 %vm787_vm4, %v747_v49 }
 0x2e4   :  { %v825_v53 = vpop.f32.mrb[8].mxu0 }
 0x2e5   :  { %v826_v54 = vadd.f32 %v969_v52, %v825_v53  ;;  %v1100_v55 = vpop.f32.mrb[9].mxu0 }
 0x2e6   :  { %v828_v56 = vpop.f32.mrb[10].mxu0 }
 0x2e7   :  { %v831_v57 = vpack.c.bf16 %v826_v54, %v826_v54  ;;  %v1101_v58 = vpop.f32.mrb[11].mxu0 }
 0x2e9   :  { %vm832_vm5 = vcmp.gt.bf16.partialorder %v831_v57, 0  ;;  %v833_v59 = vmul.bf16 1045249613, %v831_v57 }
 0x2eb   :  { %v834_v60 = vsel %vm832_vm5, %v831_v57, %v833_v59 }
 0x2ec   :  { %1107 = vmatmul.mubr.msk.bf16.vlgmr.msra.gmra.mrb[12].mxu1 %vm858_vm6, %v834_v60 }
 0x3bf   :  { %v896_v61 = vpop.f32.mrb[12].mxu1 }
 0x3c0   :  { %v897_v62 = vadd.f32 %v975_v45, %v896_v61  ;;  %v1108_v63 = vpop.f32.mrb[13].mxu1 }
 0x3c1   :  { %v899_v0 = vpop.f32.mrb[14].mxu1 }
 0x3c2   :  { %903 = vst.msk [vmem:[%s1385_s10] sm:$0xff] %vm902_vm7, %v897_v62  ;;  %v1109_v1 = vpop.f32.mrb[15].mxu1 }
 0x3c3   :  { %908 = vsyncpa [#allocation6], 1 }

</bundles_post_ra>
